<compile_context>
chip_gen: v6e
topology: v6e:2x2x1
jax: 0.10.0
libtpu: 0.0.40
codegen_flags: <defaults>
</compile_context>

<pallas_src>
from typing import Union

import jax
import jax.numpy as jnp
from jax.experimental import pallas as pl
from jax.experimental.pallas import tpu as pltpu


# ----------------------------------------------------------------------------
# helpers
# ----------------------------------------------------------------------------
def _round_up(x: int, m: int) -> int:
    return (x + m - 1) // m * m


def _cdiv(a: int, b: int) -> int:
    return (a + b - 1) // b


def choose_output_tile(in_dim: int, out_dim: int, *,
                       compute_dtype=jnp.bfloat16,
                       weight_budget_bytes: int = 20 * 1024 * 1024) -> int:
    """Largest output-column tile (multiple of 128) whose fused [K, 2*tn] weight
    block fits the per-generation VMEM weight budget when double-buffered."""
    itemsize = jnp.dtype(compute_dtype).itemsize
    tn = _round_up(out_dim, 128)
    while tn > 128 and 2 * in_dim * 2 * tn * itemsize > weight_budget_bytes:
        tn = max(128, _round_up(tn // 2, 128))
    return tn


def fuse_projection_params(w_loc, b_loc, w_scale, b_scale, *, tn: int,
                           compute_dtype=jnp.bfloat16):
    """Pack the loc/scale projections into one fused weight laid out as
    per-output-tile column groups  [... | loc_j (tn) | scale_j (tn) | ...],
    so every (batch-tile, n-tile) grid point needs a single wide MXU matmul.

    Returns (w_cat: [K, nn*2*tn] compute_dtype, b_cat: [1, nn*2*tn] float32).
    """
    in_dim, out_dim = w_loc.shape
    nn = _cdiv(out_dim, tn)
    width = nn * 2 * tn
    w_cat = jnp.zeros((in_dim, width), jnp.float32)
    b_cat = jnp.zeros((1, width), jnp.float32)
    b_loc = jnp.reshape(b_loc, (1, -1))
    b_scale = jnp.reshape(b_scale, (1, -1))
    for j in range(nn):
        lo = j * tn
        hi = min(out_dim, lo + tn)
        w = hi - lo
        base = j * 2 * tn
        w_cat = w_cat.at[:, base:base + w].set(w_loc[:, lo:hi])
        w_cat = w_cat.at[:, base + tn:base + tn + w].set(w_scale[:, lo:hi])
        b_cat = b_cat.at[:, base:base + w].set(b_loc[:, lo:hi])
        b_cat = b_cat.at[:, base + tn:base + tn + w].set(b_scale[:, lo:hi])
    # TODO(synk): K (in_dim) is left un-padded; ragged K only costs partial MXU
    # passes and padding it would force a matching pad of x in HBM.
    return w_cat.astype(compute_dtype), b_cat


def _choose_tb(batch: int, tb_req: int, in_dim: int, tn: int,
               x_itemsize: int, out_itemsize: int,
               act_budget_bytes: int = 20 * 1024 * 1024) -> int:
    """Batch tile: multiple of 16 (bf16 sublane packing), >=2 tiles when the
    batch allows it (v7x megacore), capped by the activation-side VMEM budget."""
    tb = min(tb_req, _round_up(batch, 16))
    if batch > 16:
        tb = min(tb, _round_up(_cdiv(batch, 2), 16))
    tb = max(16, _round_up(tb, 16))

    def _act_bytes(t):
        return (2 * t * in_dim * x_itemsize        # x tile, double buffered
                + 2 * 2 * t * tn * out_itemsize    # loc+scale tiles, double buffered
                + t * 2 * tn * 4                   # f32 matmul accumulator
                + t * in_dim * 2)                  # in-kernel bf16 copy of x

    while tb > 16 and _act_bytes(tb) > act_budget_bytes:
        tb = max(16, _round_up(tb // 2, 16))
    return tb


# ----------------------------------------------------------------------------
# Pallas kernel: one fused matmul per tile
#   y = x @ [w_loc_j | w_scale_j] + b   ->  loc = y[:, :tn], scale = softplus(y[:, tn:])
# ----------------------------------------------------------------------------
def _fused_normal_params_kernel(x_ref, w_ref, b_ref, loc_ref, scale_ref):
    tn = loc_ref.shape[-1]
    # in-kernel cast to the MXU operand dtype (hidden under the matmul)
    xb = x_ref[...].astype(w_ref.dtype)
    # single wide MXU call: [TB, K] x [K, 2*tn], bf16 operands, f32 accumulate
    y = jnp.dot(xb, w_ref[...], preferred_element_type=jnp.float32)
    y = y + b_ref[...]                       # bias stays f32
    loc = y[:, :tn]                          # static, 128-aligned slices
    pre = y[:, tn:]
    loc_ref[...] = loc.astype(loc_ref.dtype)
    # numerically stable softplus with a single exp / log1p; floored so scale > 0
    sp = jnp.maximum(pre, 0.0) + jnp.log1p(jnp.exp(-jnp.abs(pre)))
    scale_ref[...] = jnp.maximum(sp, 1e-12).astype(scale_ref.dtype)


def normal_params_pallas(x, w_cat, b_cat, out_dim: int, *, tn: int,
                         tb: int = 512, out_dtype=jnp.float32):
    """Batch- and (optionally) output-tiled pallas_call.

    x:      [B, K]   any float dtype (cast to w_cat.dtype inside the kernel)
    w_cat:  [K, nn*2*tn]  fused per-tile [loc|scale] weights (bf16 recommended)
    b_cat:  [1, nn*2*tn]  fused bias (f32)
    Returns (loc, scale), each exactly [B, out_dim] in `out_dtype`
    (no padding, no strip copies).
    """
    batch, in_dim = x.shape
    width = w_cat.shape[1]
    assert tn % 128 == 0
    assert width % (2 * tn) == 0, "fused weight width must be nn * 2 * tn"
    nn = width // (2 * tn)
    assert nn == _cdiv(out_dim, tn), "fused weight does not match out_dim / tn"

    x_itemsize = jnp.dtype(x.dtype).itemsize
    w_itemsize = jnp.dtype(w_cat.dtype).itemsize
    o_itemsize = jnp.dtype(out_dtype).itemsize

    tb = _choose_tb(batch, tb, in_dim, tn, x_itemsize, o_itemsize)
    nb = _cdiv(batch, tb)
    grid = (nb, nn)

    # explicit scoped-VMEM limit sized to the actual buffers (+headroom)
    vmem_need = (2 * tb * in_dim * x_itemsize          # x, double buffered
                 + 2 * in_dim * 2 * tn * w_itemsize    # weight block, double buffered
                 + 2 * 2 * tn * 4                      # bias, double buffered
                 + 2 * 2 * tb * tn * o_itemsize        # loc+scale tiles, double buffered
                 + tb * 2 * tn * 4                     # f32 accumulator
                 + tb * in_dim * w_itemsize)           # in-kernel bf16 x copy
    vmem_limit = int(min(60 * 1024 * 1024,
                         max(32 * 1024 * 1024, int(1.3 * vmem_need) + (1 << 20))))

    weight_reads = 1 if nn == 1 else nb                # resident vs re-streamed
    cost = pl.CostEstimate(
        flops=int(2 * batch * in_dim * width),
        transcendentals=int(2 * batch * tn * nn),
        bytes_accessed=int(batch * in_dim * x_itemsize
                           + weight_reads * in_dim * width * w_itemsize
                           + width * 4
                           + 2 * batch * out_dim * o_itemsize),
    )

    loc, scale = pl.pallas_call(
        _fused_normal_params_kernel,
        grid=grid,
        in_specs=[
            pl.BlockSpec((tb, in_dim), lambda i, j: (i, 0)),      # batch-tiled x
            pl.BlockSpec((in_dim, 2 * tn), lambda i, j: (0, j)),  # fused weight tile
            pl.BlockSpec((1, 2 * tn), lambda i, j: (0, j)),       # fused bias tile
        ],
        out_specs=[
            pl.BlockSpec((tb, tn), lambda i, j: (i, j)),
            pl.BlockSpec((tb, tn), lambda i, j: (i, j)),
        ],
        out_shape=[
            jax.ShapeDtypeStruct((batch, out_dim), out_dtype),    # exact shapes:
            jax.ShapeDtypeStruct((batch, out_dim), out_dtype),    # no pad, no strip
        ],
        compiler_params=pltpu.CompilerParams(
            dimension_semantics=("parallel", "arbitrary"),
            vmem_limit_bytes=vmem_limit),
        cost_estimate=cost,
    )(x, w_cat, b_cat)
    return loc, scale


# ----------------------------------------------------------------------------
# Lightweight "distribution" object (JAX analogue of torch Normal)
# ----------------------------------------------------------------------------
class DiagNormal:
    def __init__(self, loc, scale, key):
        self.loc = loc
        self.scale = scale
        self._key = key

    @property
    def mean(self):
        return self.loc

    def rsample(self):
        # Advance the key on every call so repeated draws are independent.
        # NOTE: this is a host-side (Python) key advance; do not capture this
        # object inside a jitted function and call rsample() repeatedly there.
        self._key, sub = jax.random.split(self._key)
        eps = jax.random.normal(sub, self.loc.shape, jnp.float32).astype(self.loc.dtype)
        return self.loc + self.scale * eps


# ----------------------------------------------------------------------------
# Base class: faithful port of component_base_class
# ----------------------------------------------------------------------------
_LEGAL_STAGES = {
    'pretrain',
    'dimension reduction',
    'clustering',
    'abundance effect estimation',
    'expression effect estimation',
}


class component_base_class:
    def __init__(self, stage_to_change: Union[str, list, tuple],
                 distribution_info: dict) -> None:
        if isinstance(stage_to_change, str):
            stage_to_change = set([stage_to_change])
        else:
            stage_to_change = set(stage_to_change)
        assert stage_to_change <= _LEGAL_STAGES, 'Illegal stage...'
        self.stage_to_change = stage_to_change

        has_extra_info = False
        self.distribution_dict = {}
        for dist in distribution_info:
            if distribution_info[dist] is not None:
                has_extra_info = True
            self.distribution_dict[dist] = None
        self.distribution_info_dict = {}
        if has_extra_info:
            for dist in distribution_info:
                self.distribution_info_dict[dist] = distribution_info[dist]
        self.samples = {dist: None for dist in self.distribution_dict}

        # JAX has no requires_grad; track trainability as a flag instead.
        self._trainable = False
        self.params = {}

    def _update_stage(self, stage: str) -> None:
        self._trainable = stage in self.stage_to_change

    def _update_distributions(self, **kwargs) -> None:
        # Abstract in the base class — no compute to port.
        raise NotImplementedError

    def get_samples(self, get_mean: bool = False) -> dict:
        for dist in self.distribution_dict:
            d = self.distribution_dict[dist]
            if get_mean:
                self.samples[dist] = d.mean
            elif hasattr(d, 'rsample'):
                self.samples[dist] = d.rsample()
            else:
                self.samples[dist] = d.sample()
        return self.samples

    def forward(self, **kwargs) -> dict:
        self._update_distributions(**kwargs)
        return self.distribution_dict

    __call__ = forward


# ----------------------------------------------------------------------------
# Minimal concrete subclass whose hot path runs in the Pallas kernel
# ----------------------------------------------------------------------------
class demo_normal_component(component_base_class):
    """Concrete example: infers a diagonal Normal over a latent 'z'."""

    def __init__(self, stage_to_change, in_dim: int, out_dim: int, key,
                 compute_dtype=jnp.bfloat16, out_dtype=jnp.float32,
                 tb: int = 512) -> None:
        super().__init__(stage_to_change=stage_to_change,
                         distribution_info={'z': None})
        k1, k2, self._sample_key = jax.random.split(key, 3)
        init_scale = 1.0 / jnp.sqrt(jnp.float32(in_dim))
        self.params = {
            'w_loc': jax.random.normal(k1, (in_dim, out_dim), jnp.float32) * init_scale,
            'b_loc': jnp.zeros((1, out_dim), jnp.float32),
            'w_scale': jax.random.normal(k2, (in_dim, out_dim), jnp.float32) * init_scale,
            'b_scale': jnp.zeros((1, out_dim), jnp.float32),
        }
        self._in_dim = in_dim
        self._out_dim = out_dim
        self._tb = tb
        self._out_dtype = out_dtype
        self._compute_dtype = compute_dtype
        self._tn = choose_output_tile(in_dim, out_dim, compute_dtype=compute_dtype)
        self._refresh_fused()

    def _refresh_fused(self) -> None:
        """Re-fuse / re-cast the projection params (call after any param update)."""
        self._w_cat, self._b_cat = fuse_projection_params(
            self.params['w_loc'], self.params['b_loc'],
            self.params['w_scale'], self.params['b_scale'],
            tn=self._tn, compute_dtype=self._compute_dtype)

    def update_params(self, **new_params) -> None:
        self.params.update(new_params)
        self._refresh_fused()

    def _update_distributions(self, x) -> None:
        loc, scale = normal_params_pallas(
            x, self._w_cat, self._b_cat, self._out_dim,
            tn=self._tn, tb=self._tb, out_dtype=self._out_dtype)
        self._sample_key, sub = jax.random.split(self._sample_key)
        self.distribution_dict['z'] = DiagNormal(loc, scale, sub)


# TODO(synk): the base class forward itself has no tensor compute (abstract
# _update_distributions); only the demo subclass's hot path is a Pallas kernel.
# TODO(synk): sampling (eps generation) stays in JAX-land; it could be fused
# into the kernel via pltpu.prng_seed + pltpu.stateful_normal if needed.


if __name__ == "__main__":
    key = jax.random.PRNGKey(0)
    k_x, k_mod = jax.random.split(key)

    # small shapes; batch deliberately not a multiple of the chosen batch tile
    batch, in_dim, out_dim = 40, 32, 16
    x = jax.random.normal(k_x, (batch, in_dim), jnp.float32)

    comp = demo_normal_component(stage_to_change='pretrain',
                                 in_dim=in_dim, out_dim=out_dim, key=k_mod)
    comp._update_stage('pretrain')

    dist_dict = comp(x=x)                 # forward pass (Pallas kernel inside)
    samples_a = comp.get_samples(get_mean=False)
    draw_a = samples_a['z']
    samples_b = comp.get_samples(get_mean=False)
    draw_b = samples_b['z']
    means = comp.get_samples(get_mean=True)

    loc = dist_dict['z'].loc
    scale_v = dist_dict['z'].scale
    for a in (loc, scale_v, draw_a, draw_b, means['z']):
        jax.block_until_ready(a)

    # reference computed with the same bf16-rounded operands the MXU consumes
    xb = x.astype(jnp.bfloat16).astype(jnp.float32)
    wlb = comp.params['w_loc'].astype(jnp.bfloat16).astype(jnp.float32)
    wsb = comp.params['w_scale'].astype(jnp.bfloat16).astype(jnp.float32)
    ref_loc = xb @ wlb + comp.params['b_loc']
    ref_scale = jax.nn.softplus(xb @ wsb + comp.params['b_scale'])

    assert loc.shape == (batch, out_dim) and scale_v.shape == (batch, out_dim)
    assert jnp.allclose(loc, ref_loc, atol=1e-4, rtol=1e-4)
    assert jnp.allclose(scale_v, ref_scale, atol=1e-4, rtol=1e-4)
    assert bool(jnp.all(scale_v > 0))
    # repeated rsample() calls must not return identical draws (key is advanced)
    assert not jnp.allclose(draw_a, draw_b)
    assert jnp.allclose(means['z'], loc)

    # bf16-output fast path (halves output HBM writeback; biggest win on v5e/v6e)
    loc16, scale16 = normal_params_pallas(
        x, comp._w_cat, comp._b_cat, out_dim, tn=comp._tn,
        out_dtype=jnp.bfloat16)
    jax.block_until_ready(loc16)
    jax.block_until_ready(scale16)
    assert loc16.dtype == jnp.bfloat16 and loc16.shape == (batch, out_dim)
    assert jnp.allclose(loc16.astype(jnp.float32), ref_loc, atol=3e-2, rtol=3e-2)
    assert jnp.allclose(scale16.astype(jnp.float32), ref_scale, atol=3e-2, rtol=3e-2)

    print("KERNEL_OK")
</pallas_src>

<mosaic_0001>
module attributes {stable_mosaic.version = 11 : i64} {
  func.func @_fused_normal_params_kernel(%arg0: i32, %arg1: i32, %arg2: memref<32x32xf32, #tpu.memory_space<vmem>>, %arg3: memref<32x256xbf16, #tpu.memory_space<vmem>>, %arg4: memref<1x256xf32, #tpu.memory_space<vmem>>, %arg5: memref<32x128xf32, #tpu.memory_space<vmem>>, %arg6: memref<32x128xf32, #tpu.memory_space<vmem>>) attributes {dimension_semantics = [#tpu.dimension_semantics<parallel>, #tpu.dimension_semantics<arbitrary>], iteration_bounds = array<i64: 2, 1>, scalar_prefetch = 0 : i64, scratch_operands = 0 : i64, tpu.core_type = #tpu.core_type<tc>, window_params = [{transform_indices = @transform_0, window_bounds = array<i64: 32, 32>}, {transform_indices = @transform_1, window_bounds = array<i64: 32, 256>}, {transform_indices = @transform_2, window_bounds = array<i64: 1, 256>}, {transform_indices = @transform_3, window_bounds = array<i64: 32, 128>}, {transform_indices = @transform_4, window_bounds = array<i64: 32, 128>}]} {
    %c0 = arith.constant 0 : index
    %c0_0 = arith.constant 0 : index
    %0 = vector.load %arg2[%c0, %c0_0] : memref<32x32xf32, #tpu.memory_space<vmem>>, vector<32x32xf32>
    %1 = arith.truncf %0 : vector<32x32xf32> to vector<32x32xbf16>
    %c0_1 = arith.constant 0 : index
    %c0_2 = arith.constant 0 : index
    %2 = vector.load %arg3[%c0_1, %c0_2] : memref<32x256xbf16, #tpu.memory_space<vmem>>, vector<32x256xbf16>
    %cst = arith.constant dense<0.000000e+00> : vector<32x256xf32>
    %3 = tpu.matmul %1, %2, %cst {dimension_numbers = #tpu.dot_dimension_numbers<[1], [0], [0], [1], [0, 0, 1, 1], [], []>} : vector<32x32xbf16>, vector<32x256xbf16>, vector<32x256xf32> -> vector<32x256xf32>
    %c0_3 = arith.constant 0 : index
    %c0_4 = arith.constant 0 : index
    %4 = vector.load %arg4[%c0_3, %c0_4] : memref<1x256xf32, #tpu.memory_space<vmem>>, vector<1x256xf32>
    %5 = vector.broadcast %4 : vector<1x256xf32> to vector<32x256xf32>
    %6 = arith.addf %3, %5 : vector<32x256xf32>
    %7 = vector.extract_strided_slice %6 {offsets = [0, 0], sizes = [32, 128], strides = [1, 1]} : vector<32x256xf32> to vector<32x128xf32>
    %8 = vector.extract_strided_slice %6 {offsets = [0, 128], sizes = [32, 128], strides = [1, 1]} : vector<32x256xf32> to vector<32x128xf32>
    %c0_5 = arith.constant 0 : index
    %c0_6 = arith.constant 0 : index
    %9 = vector.load %arg5[%c0_5, %c0_6] : memref<32x128xf32, #tpu.memory_space<vmem>>, vector<32x128xf32>
    tpu.vector_store %arg5[%c0_5, %c0_6], %7 {strides = array<i32>} : memref<32x128xf32, #tpu.memory_space<vmem>>, vector<32x128xf32>,
    %cst_7 = arith.constant 0.000000e+00 : f32
    %10 = vector.broadcast %cst_7 : f32 to vector<32x128xf32>
    %11 = arith.maximumf %8, %10 : vector<32x128xf32>
    %12 = math.absf %8 : vector<32x128xf32>
    %cst_8 = arith.constant 0.000000e+00 : f32
    %13 = vector.broadcast %cst_8 : f32 to vector<32x128xf32>
    %14 = arith.subf %13, %12 : vector<32x128xf32>
    %15 = math.exp %14 : vector<32x128xf32>
    %16 = math.log1p %15 : vector<32x128xf32>
    %17 = arith.addf %11, %16 : vector<32x128xf32>
    %cst_9 = arith.constant 9.99999996E-13 : f32
    %18 = vector.broadcast %cst_9 : f32 to vector<32x128xf32>
    %19 = arith.maximumf %17, %18 : vector<32x128xf32>
    %c0_10 = arith.constant 0 : index
    %c0_11 = arith.constant 0 : index
    %20 = vector.load %arg6[%c0_10, %c0_11] : memref<32x128xf32, #tpu.memory_space<vmem>>, vector<32x128xf32>
    tpu.vector_store %arg6[%c0_10, %c0_11], %19 {strides = array<i32>} : memref<32x128xf32, #tpu.memory_space<vmem>>, vector<32x128xf32>,
    return
  }
  func.func @transform_0(%arg0: i32, %arg1: i32) -> (i32, i32) {
    %c0_i32 = arith.constant 0 : i32
    %c0_i32_0 = arith.constant 0 : i32
    return %arg0, %c0_i32 : i32, i32
  }
  func.func @transform_1(%arg0: i32, %arg1: i32) -> (i32, i32) {
    %c0_i32 = arith.constant 0 : i32
    %c0_i32_0 = arith.constant 0 : i32
    return %c0_i32, %arg1 : i32, i32
  }
  func.func @transform_2(%arg0: i32, %arg1: i32) -> (i32, i32) {
    %c0_i32 = arith.constant 0 : i32
    %c0_i32_0 = arith.constant 0 : i32
    return %c0_i32, %arg1 : i32, i32
  }
  func.func @transform_3(%arg0: i32, %arg1: i32) -> (i32, i32) {
    %c0_i32 = arith.constant 0 : i32
    return %arg0, %arg1 : i32, i32
  }
  func.func @transform_4(%arg0: i32, %arg1: i32) -> (i32, i32) {
    %c0_i32 = arith.constant 0 : i32
    return %arg0, %arg1 : i32, i32
  }
}

</mosaic_0001>

<bundles_post_ra>
// kernel: tpu_custom_call.1
= control target key start
LH: loop header
LB: loop body
LE: loop exit
PB: predicated region body
PF: predicated region fallthrough
CT: control target
= control target key end

     0   :  { %s1381_s15 = smov 0   ;;  %s1383_s16 = smov 0   ;;  %s1587_s0 = inlined_call_operand.vmem [shape: f32[40,32], index: 0, kind: input, shape index: {}]   ;;  %s1588_s1 = inlined_call_operand.vmem [shape: bf16[32,256], index: 1, kind: input, shape index: {}]   ;;  %s1589_s2 = inlined_call_operand.vmem [shape: f32[1,256], index: 2, kind: input, shape index: {}]   ;;  %s1590_s3 = inlined_call_operand.vmem [shape: f32[40,16], index: 3, kind: output, shape index: {0}]   ;;  %s1591_s4 = inlined_call_operand.vmem [shape: f32[40,16], index: 4, kind: output, shape index: {1}]  }
   0x1   :  { %s1385_s17 = smov 0   ;;  %s1387_s18 = smov 0  }
   0x2   :  { %s1389_s19 = smov 0  }
   0x3 LB: > { %s937_s20 = sadd.s32 4294967295, %s1289_s19   ;;  %s27_s21 = sadd.s32 1, %s1285_s18  ;;  %s1289_s19 = sphi %s1389_s19, %s15_s19   ;;  %s1285_s18 = sphi %s1387_s18, %s1602_s18   ;;  %s1281_s17 = sphi %s1385_s17, %s1601_s17   ;;  %s1277_s16 = sphi %s1383_s16, %s1600_s16   ;;  %s1273_s15 = sphi %s1381_s15, %s1599_s15  }
   0x4   : > { %p29_p0 = scmp.ge.s32.totalorder %s27_s21, 2  ;;  %s114_s22 = sadd.s32 1, %s1277_s16 }
   0x5   : > { %p124_p1 = scmp.ne.s32.totalorder %s1277_s16, %s1273_s15  ;;  %p125_p2 = scmp.eq.s32.totalorder %s937_s20, 1 }
   0x6   : > { %s1604_s21 = smov (%p29_p0, %s27_s21), 0  ;;  %p943_p4 = scmp.ge.s32.totalorder %s1289_s19, 1 }
   0x7   : > { %p1413_p3 = por %p125_p2, %p124_p1  ;;  %s109_s24 = ssub.s32 %s1285_s18, %s1604_s21 }
   0x8   : > { %p211_p5 = scmp.lt.s32.totalorder %s1289_s19, 3  ;;  %p112_p6 = scmp.eq.s32.totalorder %s109_s24, 0 }
   0xa   : > { %p212_p7 = pnand %p943_p4, %p211_p5 }
   0xb   : > { %s1422_s25 = scalar_select %p112_p6, %s1277_s16, %s114_s22  }
   0xc   : > { %215 = sbr.rel (%p212_p7) target bundleno = 356 (0x164), region = 32  ;;  %s1428_s28 = sshll.u32 (!%p212_p7), %s1281_s17, 2 }
   0xd   : > { %p258_p8 = scmp.lt.s32.totalorder (!%p212_p7), %s1428_s28, 4  ;;  %s244_s14 = sand.u32 (!%p212_p7), 1, %s1273_s15  }
   0xe   : > { %s1448_s24 = sshll.u32 (!%p212_p7), %s244_s14, 5 }
   0xf   : > { %s1451_s26 = scalar_lea.vmem (!%p212_p7), [#allocation2], %s1448_s24   ;;  %s1474_s15 = scalar_lea.vmem (!%p212_p7), [#allocation3], %s1448_s24  }
  0x11   : > { %v1165_v0 = vld [vmem:[%s1588_s1 + $0x14] ss:$8 sps:$4 sm:$0xff]   ;;  %v1167_v1 = vld [vmem:[%s1588_s1 + $0x10] ss:$8 sps:$4 sm:$0xff]   ;;  %v1355_v2 = vmov 0   ;;  %s259_s9 = scalar_select %p258_p8, %s1428_s28, 4  ;;  %v301_v11 = vlaneseq }
  0x12   : > { %370 = vmatprep.mubr.bf16.mxu0 %v1355_v2  ;;  %380 = vmatprep.mubr.bf16.mxu1 %v1355_v2  ;;  %v1168_v3 = vld [vmem:[%s1588_s1 + $0x4] ss:$8 sps:$4 sm:$0xff]   ;;  %v1170_v4 = vld [vmem:[%s1588_s1] ss:$8 sps:$4 sm:$0xff]   ;;  %vm331_vm0 = vcmask 261120   ;;  %s475_s27 = ssub.s32 (%p1413_p3), 5, %s1428_s28 }
  0x13   : > { %350 = vmatprep.subr.bf16.mxu0 %v1165_v0  ;;  %992 = vmatprep.subr.bf16.mxu1 %v1165_v0  ;;  %s947_s10 = sshll.u32 %s259_s9, 3  ;;  %v302_v12 = vshrl.u32 %v301_v11, 7  ;;  %v299_v14 = vld [vmem:[%s1589_s2] sm:$0x3]  ;;  %s986_s29 = sshll.u32 (%p1413_p3), %s1281_s17, 5 }
  0x14   : > { %351 = vmatpush1.bf16.msra.mxu0 %v1167_v1  ;;  %994 = vmatpush1.bf16.msra.mxu1 %v1167_v1  ;;  %s261_s13 = scalar_lea.vmem %s1587_s0, %s947_s10  ;;  %p476_p9 = scmp.lt.s32.totalorder (%p1413_p3), %s475_s27, 4 }
  0x15   : > { %352 = vmatprep.subr.bf16.mxu0 %v1168_v3  ;;  %993 = vmatprep.subr.bf16.mxu1 %v1168_v3  ;;  %v289_v5 = vld [vmem:[%s261_s13] sm:$0xff]  ;;  %v290_v6 = vld [vmem:[%s261_s13 + $0x8] sm:$0xff]  ;;  %v291_v7 = vld [vmem:[%s261_s13 + $0x10] sm:$0xff]  ;;  %v303_v13 = vsub.s32 0, %v302_v12  ;;  %v307_v15 = vsub.s32 1, %v302_v12  ;;  %s1487_s6 = scalar_lea.vmem (%p1413_p3), %s1590_s3, %s986_s29  }
  0x16   : > { %v293_v8 = vpack.c.bf16 %v290_v6, %v289_v5  ;;  %v292_v9 = vld [vmem:[%s261_s13 + $0x18] sm:$0xff] }
  0x17   : > { %v294_v10 = vpack.c.bf16 %v292_v9, %v291_v7  ;;  %v304_v16 = vrot.slane %v299_v14, %v303_v13  ;;  %v308_v17 = vrot.slane %v299_v14, %v307_v15 }
  0x18   : > { %353 = vmatpush1.bf16.msra.mxu0 %v1170_v4  ;;  %995 = vmatpush1.bf16.msra.mxu1 %v1170_v4 }
  0x1b   : > { %952 = vmatmul.mubr.msk.bf16.vlgmr.msra.gmra.mxu0 %vm331_vm0, %v293_v8  ;;  %953 = vmatmul.mubr.msk.bf16.vlgmr.msra.gmra.mxu1 %vm331_vm0, %v294_v10 }
  0xdb   : > { %v372_v18 = vpop.f32.mrf.mxu0  ;;  %v382_v20 = vpop.f32.mrf.mxu1 }
  0xdc   : > { %v373_v19 = vadd.f32 %v372_v18, %v304_v16  ;;  %v383_v21 = vadd.f32 %v382_v20, %v304_v16 }
  0xdd   : > { %v374_v22 = vpop.f32.mrf.mxu0  ;;  %v384_v24 = vpop.f32.mrf.mxu1 }
  0xde   : > { %391 = vst [vmem:[%s1451_s26] sm:$0xff] %v373_v19  ;;  %v1454_v23 = vadd.f32 %v374_v22, %v308_v17  ;;  %393 = vst [vmem:[%s1451_s26 + $0x10] sm:$0xff] %v383_v21  ;;  %v1457_v25 = vadd.f32 %v384_v24, %v308_v17 }
  0xdf   : > { %v376_v26 = vpop.f32.mrf.mxu0  ;;  %v386_v29 = vpop.f32.mrf.mxu1 }
  0xe0   : > { %v399_v27 = vand.u32 2147483647, %v1454_v23  ;;  %v377_v28 = vadd.f32 %v376_v26, %v304_v16  ;;  %v401_v30 = vand.u32 2147483647, %v1457_v25  ;;  %v387_v31 = vadd.f32 %v386_v29, %v304_v16 }
  0xe1   : > { %v378_v32 = vpop.f32.mrf.mxu0  ;;  %v388_v35 = vpop.f32.mrf.mxu1  ;;  %v395_v63 = vmax.f32 %v1454_v23, 0.0  ;;  %v397_v9 = vmax.f32 %v1457_v25, 0.0 }
  0xe2   : > { %v403_v33 = vsub.f32 0.0, %v399_v27  ;;  %392 = vst [vmem:[%s1451_s26 + $0x8] sm:$0xff] %v377_v28  ;;  %v1462_v34 = vadd.f32 %v378_v32, %v308_v17  ;;  %v405_v36 = vsub.f32 0.0, %v401_v30  ;;  %394 = vst [vmem:[%s1451_s26 + $0x18] sm:$0xff] %v387_v31  ;;  %v1465_v37 = vadd.f32 %v388_v35, %v308_v17 }
  0xe4   : > { %v407_v38 = vmul.f32 1.442695, %v403_v33  ;;  %v400_v39 = vand.u32 2147483647, %v1462_v34  ;;  %v411_v40 = vmul.f32 1.442695, %v405_v36 }
  0xe5   : > { %v402_v41 = vand.u32 2147483647, %v1465_v37  ;;  %v396_v16 = vmax.f32 %v1462_v34, 0.0  ;;  %v398_v24 = vmax.f32 %v1465_v37, 0.0 }
  0xe6   : > { %1171 = vpow2.f32 %v407_v38  ;;  %v404_v42 = vsub.f32 0.0, %v400_v39 }
  0xe7   : > { %1173 = vpow2.f32 %v411_v40  ;;  %v406_v43 = vsub.f32 0.0, %v402_v41 }
  0xe8   : > { %v409_v44 = vmul.f32 1.442695, %v404_v42 }
  0xe9   : > { %v413_v45 = vmul.f32 1.442695, %v406_v43 }
  0xea   : > { %1175 = vpow2.f32 %v409_v44 }
  0xeb   : > { %1177 = vpow2.f32 %v413_v45 }
  0xf3   : > { %v1172_v46 = vpop.eup %1171 }
  0xf4   : > { %v1174_v47 = vpop.eup %1173  ;;  %v415_v48 = vadd.f32 1.0, %v1172_v46  ;;  %v418_v54 = vmul.f32 -0.5, %v1172_v46  ;;  %v421_v57 = vand.u32 2147483647, %v1172_v46 }
  0xf5   : > { %v433_v49 = vadd.f32 1.0, %v1174_v47  ;;  %v436_v55 = vmul.f32 -0.5, %v1174_v47  ;;  %v439_v61 = vand.u32 2147483647, %v1174_v47 }
  0xf6   : > { %1179 = vlog2.f32 %v415_v48  ;;  %v419_v56 = vadd.f32 1.0, %v418_v54  ;;  %vm422_vm1 = vcmp.lt.f32.partialorder %v421_v57, 0.0004427343 }
  0xf7   : > { %v1176_v50 = vpop.eup %1175  ;;  %1181 = vlog2.f32 %v433_v49  ;;  %v437_v59 = vadd.f32 1.0, %v436_v55  ;;  %vm440_vm2 = vcmp.lt.f32.partialorder %v439_v61, 0.0004427343 }
  0xf8   : > { %v1178_v51 = vpop.eup %1177  ;;  %v424_v52 = vadd.f32 1.0, %v1176_v50  ;;  %v427_v58 = vmul.f32 -0.5, %v1176_v50  ;;  %v420_v2 = vmul.f32 %v1172_v46, %v419_v56  ;;  %v430_v6 = vand.u32 2147483647, %v1176_v50 }
  0xf9   : > { %v442_v53 = vadd.f32 1.0, %v1178_v51  ;;  %v445_v60 = vmul.f32 -0.5, %v1178_v51  ;;  %v438_v5 = vmul.f32 %v1174_v47, %v437_v59  ;;  %v448_v10 = vand.u32 2147483647, %v1178_v51 }
  0xfa   : > { %1183 = vlog2.f32 %v424_v52  ;;  %v428_v3 = vadd.f32 1.0, %v427_v58  ;;  %vm431_vm3 = vcmp.lt.f32.partialorder %v430_v6, 0.0004427343 }
  0xfb   : > { %1185 = vlog2.f32 %v442_v53  ;;  %v446_v7 = vadd.f32 1.0, %v445_v60  ;;  %vm449_vm4 = vcmp.lt.f32.partialorder %v448_v10, 0.0004427343 }
  0xfc   : > { %v429_v18 = vmul.f32 %v1176_v50, %v428_v3 }
  0xfd   : > { %v447_v21 = vmul.f32 %v1178_v51, %v446_v7 }
 0x103   : > { %v1180_v62 = vpop.eup %1179 }
 0x104   : > { %v1182_v0 = vpop.eup %1181  ;;  %v417_v1 = vmul.f32 0.6931472, %v1180_v62 }
 0x105   : > { %v435_v4 = vmul.f32 0.6931472, %v1182_v0 }
 0x106   : > { %v423_v8 = vsel %vm422_vm1, %v420_v2, %v417_v1 }
 0x107   : > { %v1184_v11 = vpop.eup %1183  ;;  %v451_v12 = vadd.f32 %v423_v8, %v395_v63  ;;  %v441_v13 = vsel %vm440_vm2, %v438_v5, %v435_v4 }
 0x108   : > { %v1186_v14 = vpop.eup %1185  ;;  %v453_v15 = vadd.f32 %v441_v13, %v397_v9  ;;  %v426_v17 = vmul.f32 0.6931472, %v1184_v11 }
 0x109   : > { %v455_v19 = vmax.f32 %v451_v12, 1e-12  ;;  %v444_v20 = vmul.f32 0.6931472, %v1186_v14 }
 0x10a   : > { %v457_v22 = vmax.f32 %v453_v15, 1e-12  ;;  %v432_v23 = vsel %vm431_vm3, %v429_v18, %v426_v17 }
 0x10b   : > { %459 = vst [vmem:[%s1474_s15] sm:$0xff] %v455_v19  ;;  %v452_v25 = vadd.f32 %v432_v23, %v396_v16  ;;  %v450_v26 = vsel %vm449_vm4, %v447_v21, %v444_v20 }
 0x10c   : > { %461 = vst [vmem:[%s1474_s15 + $0x10] sm:$0xff] %v457_v22  ;;  %v454_v27 = vadd.f32 %v450_v26, %v398_v24  ;;  %473 = sbr.rel (!%p1413_p3) target bundleno = 312 (0x138), region = 36 }
 0x10d   : > { %v456_v28 = vmax.f32 %v452_v25, 1e-12 }
 0x10e   : > { %v458_v29 = vmax.f32 %v454_v27, 1e-12 }
 0x10f   : > { %460 = vst [vmem:[%s1474_s15 + $0x8] sm:$0xff] %v456_v28 }
 0x110   : > { %462 = vst [vmem:[%s1474_s15 + $0x18] sm:$0xff] %v458_v29 }
 0x111   : > { %s1606_s27 = smov (!%p476_p9, %s475_s27), 4 }
 0x112   : > { %s957_s7 = sshll.u32 %s1606_s27, 7 }
 0x113   : > { %p960_p10 = scmp.eq.s32.totalorder %s957_s7, 0 }
 0x114   : > { %s1493_s8 = sshrl.u32 (!%p960_p10), %s1606_s27, 2 }
 0x115   : > { %485 = sbr.rel (%p960_p10) target bundleno = 312 (0x138), region = 40  ;;  %p961_p11 = scmp.le.s32.totalorder (!%p960_p10), %s1493_s8, 0 }
 0x11a   : > { %830 = sbr.rel (%p961_p11) target bundleno = 295 (0x127), region = 194  ;;  %s1593_s9 = smov (!%p961_p11), %s1487_s6 }
 0x11b   : > { %s1594_s10 = smov (!%p961_p11), %s1451_s26  ;;  %s1502_s11 = smov (!%p961_p11), 0  }
 0x11c   : > { %s1303_s12 = smov (!%p961_p11), 0  }
 0x11f LB: >> { %v554_v30 = vld [vmem:[%s1297_s10] sm:$0xff]  ;;  %v556_v31 = vld [vmem:[%s1297_s10 + $0x8] sm:$0xff]  ;;  %v558_v32 = vld [vmem:[%s1297_s10 + $0x10] sm:$0xff]  ;;  %s562_s13 = sadd.s32 1, %s1301_s11  ;;  %s548_s12 = sadd.s32 1, %s1305_s12   ;;  %s1305_s12 = sphi %s1303_s12, %s548_s12   ;;  %s1301_s11 = sphi %s1502_s11, %s1595_s11   ;;  %s1297_s10 = sphi %s1594_s10, %s567_s10   ;;  %s1293_s9 = sphi %s1593_s9, %s568_s9  }
 0x120   : >> { %555 = vst [vmem:[%s1293_s9] sm:$0xff] %v554_v30  ;;  %557 = vst [vmem:[%s1293_s9 + $0x8] sm:$0xff] %v556_v31  ;;  %v560_v33 = vld [vmem:[%s1297_s10 + $0x18] sm:$0xff]  ;;  %p563_p12 = scmp.ge.s32.totalorder %s562_s13, %s1493_s8  ;;  %p547_p13 = scmp.ge.s32.totalorder %s548_s12, %s1493_s8 }
 0x121   : >> { %559 = vst [vmem:[%s1293_s9 + $0x10] sm:$0xff] %v558_v32  ;;  %561 = vst [vmem:[%s1293_s9 + $0x18] sm:$0xff] %v560_v33 }
 0x122   : >> { %s1608_s13 = smov (%p563_p12, %s562_s13), 0  ;;  %550 = sbr.rel (!%p547_p13) target bundleno = 287 (0x11f), region = 200 }
 0x123   : >> { %s962_s14 = sshll.u32 %s1608_s13, 5  ;;  %s1595_s11 = smov %s1608_s13 }
 0x124   : >> { %s567_s10 = scalar_lea.vmem %s1451_s26, %s962_s14 [#allocation2]   ;;  %s568_s9 = scalar_lea.vmem %s1487_s6, %s962_s14  }
 0x127 PF: > { %s1518_s20 = sand.u32 3, %s1606_s27   ;;  %s987_s22 = sshll.u32 %s1493_s8, 5 }
 0x128   : > { %s573_s24 = scalar_lea.vmem %s1451_s26, %s987_s22 [#allocation2]   ;;  %s575_s29 = scalar_lea.vmem %s1487_s6, %s987_s22  }
 0x129   : > { %p967_p0 = scmp.le.s32.totalorder %s1518_s20, 0 }
 0x12a   : > { %s1307_s30 = smov (!%p967_p0), %s575_s29   ;;  %s1311_s5 = smov (!%p967_p0), %s573_s24  }
 0x12b   : > { %844 = sbr.rel (%p967_p0) target bundleno = 312 (0x138), region = 205  ;;  %s1315_s7 = smov (!%p967_p0), 0  }
 0x12c   : > { %s1319_s11 = smov (!%p967_p0), 0  }
 0x130 LB: >> { %v585_v34 = vld [vmem:[%s1313_s5] sm:$0xff]  ;;  %s587_s27 = sadd.s32 1, %s1317_s7  ;;  %s579_s11 = sadd.s32 1, %s1321_s11   ;;  %s1321_s11 = sphi %s1319_s11, %s579_s11   ;;  %s1317_s7 = sphi %s1315_s7, %s1316_s7   ;;  %s1313_s5 = sphi %s1311_s5, %s592_s5   ;;  %s1309_s30 = sphi %s1307_s30, %s593_s30  }
 0x131   : >> { %586 = vst [vmem:[%s1309_s30] sm:$0xff] %v585_v34  ;;  %p588_p1 = scmp.ge.s32.totalorder %s587_s27, %s1518_s20  ;;  %p578_p2 = scmp.ge.s32.totalorder %s579_s11, %s1518_s20 }
 0x133   : >> { %s1610_s27 = smov (%p588_p1, %s587_s27), 0  ;;  %581 = sbr.rel (!%p578_p2) target bundleno = 304 (0x130), region = 211 }
 0x134   : >> { %s968_s26 = sshll.u32 %s1610_s27, 3  ;;  %s1316_s7 = smov %s1610_s27  }
 0x135   : >> { %s592_s5 = scalar_lea.vmem %s573_s24, %s968_s26 [#allocation2]   ;;  %s593_s30 = scalar_lea.vmem %s575_s29, %s968_s26  }
 0x138 PF: > { %599 = sbr.rel (!%p1413_p3) target bundleno = 356 (0x164), region = 88  ;;  %s601_s6 = ssub.s32 (%p1413_p3), 5, %s1428_s28 }
 0x139   : > { %s989_s8 = sshll.u32 (%p1413_p3), %s1281_s17, 5  ;;  %p602_p4 = scmp.lt.s32.totalorder (%p1413_p3), %s601_s6, 4 }
 0x13a   : > { %s1533_s12 = scalar_lea.vmem (%p1413_p3), %s1591_s4, %s989_s8  }
 0x13d   : > { %s1612_s6 = smov (!%p602_p4, %s601_s6), 4 }
 0x13e   : > { %s971_s13 = sshll.u32 %s1612_s6, 7 }
 0x13f   : > { %p974_p5 = scmp.eq.s32.totalorder %s971_s13, 0 }
 0x140   : > { %s1539_s14 = sshrl.u32 (!%p974_p5), %s1612_s6, 2 }
 0x141   : > { %611 = sbr.rel (%p974_p5) target bundleno = 356 (0x164), region = 92  ;;  %p975_p3 = scmp.le.s32.totalorder (!%p974_p5), %s1539_s14, 0 }
 0x146   : > { %858 = sbr.rel (%p975_p3) target bundleno = 339 (0x153), region = 216  ;;  %s1596_s17 = smov (!%p975_p3), %s1533_s12 }
 0x147   : > { %s1597_s23 = smov (!%p975_p3), %s1474_s15  ;;  %s1548_s28 = smov (!%p975_p3), 0  }
 0x148   : > { %s1335_s20 = smov (!%p975_p3), 0  }
 0x14b LB: >> { %v680_v35 = vld [vmem:[%s1329_s23] sm:$0xff]  ;;  %v682_v36 = vld [vmem:[%s1329_s23 + $0x8] sm:$0xff]  ;;  %v684_v37 = vld [vmem:[%s1329_s23 + $0x10] sm:$0xff]  ;;  %s688_s22 = sadd.s32 1, %s1333_s28  ;;  %s674_s20 = sadd.s32 1, %s1337_s20   ;;  %s1337_s20 = sphi %s1335_s20, %s674_s20   ;;  %s1333_s28 = sphi %s1548_s28, %s1598_s28   ;;  %s1329_s23 = sphi %s1597_s23, %s693_s23   ;;  %s1325_s17 = sphi %s1596_s17, %s694_s17  }
 0x14c   : >> { %681 = vst [vmem:[%s1325_s17] sm:$0xff] %v680_v35  ;;  %683 = vst [vmem:[%s1325_s17 + $0x8] sm:$0xff] %v682_v36  ;;  %v686_v38 = vld [vmem:[%s1329_s23 + $0x18] sm:$0xff]  ;;  %p689_p6 = scmp.ge.s32.totalorder %s688_s22, %s1539_s14  ;;  %p673_p7 = scmp.ge.s32.totalorder %s674_s20, %s1539_s14 }
 0x14d   : >> { %685 = vst [vmem:[%s1325_s17 + $0x10] sm:$0xff] %v684_v37  ;;  %687 = vst [vmem:[%s1325_s17 + $0x18] sm:$0xff] %v686_v38 }
 0x14e   : >> { %s1614_s22 = smov (%p689_p6, %s688_s22), 0  ;;  %676 = sbr.rel (!%p673_p7) target bundleno = 331 (0x14b), region = 222 }
 0x14f   : >> { %s976_s24 = sshll.u32 %s1614_s22, 5  ;;  %s1598_s28 = smov %s1614_s22 }
 0x150   : >> { %s693_s23 = scalar_lea.vmem %s1474_s15, %s976_s24 [#allocation3]   ;;  %s694_s17 = scalar_lea.vmem %s1533_s12, %s976_s24  }
 0x153 PF: > { %s1564_s29 = sand.u32 3, %s1612_s6   ;;  %s990_s30 = sshll.u32 %s1539_s14, 5 }
 0x154   : > { %s699_s5 = scalar_lea.vmem %s1474_s15, %s990_s30 [#allocation3]   ;;  %s701_s7 = scalar_lea.vmem %s1533_s12, %s990_s30  }
 0x155   : > { %p981_p8 = scmp.le.s32.totalorder %s1564_s29, 0 }
 0x156   : > { %s1339_s11 = smov (!%p981_p8), %s701_s7   ;;  %s1343_s27 = smov (!%p981_p8), %s699_s5  }
 0x157   : > { %872 = sbr.rel (%p981_p8) target bundleno = 356 (0x164), region = 227  ;;  %s1347_s26 = smov (!%p981_p8), 0  }
 0x158   : > { %s1351_s8 = smov (!%p981_p8), 0  }
 0x15c LB: >> { %v711_v39 = vld [vmem:[%s1345_s27] sm:$0xff]  ;;  %s713_s6 = sadd.s32 1, %s1349_s26  ;;  %s705_s8 = sadd.s32 1, %s1353_s8   ;;  %s1353_s8 = sphi %s1351_s8, %s705_s8   ;;  %s1349_s26 = sphi %s1347_s26, %s1348_s26   ;;  %s1345_s27 = sphi %s1343_s27, %s718_s27   ;;  %s1341_s11 = sphi %s1339_s11, %s719_s11  }
 0x15d   : >> { %712 = vst [vmem:[%s1341_s11] sm:$0xff] %v711_v39  ;;  %p714_p9 = scmp.ge.s32.totalorder %s713_s6, %s1564_s29  ;;  %p704_p10 = scmp.ge.s32.totalorder %s705_s8, %s1564_s29 }
 0x15f   : >> { %s1616_s6 = smov (%p714_p9, %s713_s6), 0  ;;  %707 = sbr.rel (!%p704_p10) target bundleno = 348 (0x15c), region = 233 }
 0x160   : >> { %s982_s15 = sshll.u32 %s1616_s6, 3  ;;  %s1348_s26 = smov %s1616_s6  }
 0x161   : >> { %s718_s27 = scalar_lea.vmem %s699_s5, %s982_s15 [#allocation3]   ;;  %s719_s11 = scalar_lea.vmem %s701_s7, %s982_s15  }
 0x164 PF: > { %s15_s19 = sadd.s32 1, %s1289_s19   ;;  %s1599_s15 = smov %s1277_s16 }
 0x165   : > { %p12_p11 = scmp.ge.s32.totalorder %s15_s19, 4   ;;  %s1600_s16 = smov %s1422_s25 }
 0x166   : > { %s1601_s17 = smov %s1285_s18  ;;  %s1602_s18 = smov %s1604_s21 }
 0x167   :  { %14 = sbr.rel (!%p12_p11) target bundleno = 3 (0x3), region = 244 }

</bundles_post_ra>
